<compile_context>
chip_gen: v6e
topology: v6e:2x2x1
jax: 0.10.0
libtpu: 0.0.40
codegen_flags: <defaults>
</compile_context>

<pallas_src>
import functools

import jax
import jax.numpy as jnp
from jax.experimental import pallas as pl
from jax.experimental.pallas import tpu as pltpu

ALPHA = 1.0
GAMMA = 2.0            # fixed at 2 -> explicit square in the kernel
IGNORE_INDEX = -100

_LANE = 128
_SUBLANE = 8


def _round_up(x, m):
    return ((x + m - 1) // m) * m


def _tpu_vmem_bytes():
    try:
        return int(pltpu.get_tpu_info().vmem_capacity_bytes)
    except Exception:
        return 128 * 1024 * 1024          # assume v5e/v6e-class if query fails


def _pick_tb(batch, rows_that_fit):
    """Rows per batch tile: multiple of 8, capped so there are >=2 grid tiles
    whenever batch > 8 (v7x megacore split; harmless on single-TC chips)."""
    b8 = _round_up(batch, _SUBLANE)
    if batch < _SUBLANE:
        return batch                      # block dim == full array dim (legal)
    tb = max(_SUBLANE, (rows_that_fit // _SUBLANE) * _SUBLANE)
    tb = min(tb, b8)
    if batch > _SUBLANE and b8 <= tb:
        tb = max(_SUBLANE, _round_up(b8 // 2, _SUBLANE))
    return tb


def _plan(batch, num_classes):
    """Returns (tb, tc). tc is None when a whole class row fits one tile
    (simple 1-D batch grid); otherwise tc is the class-block for the streamed
    (online-LSE) 2-D grid path."""
    vmem = _tpu_vmem_bytes()
    small_vmem = vmem <= 80 * 1024 * 1024                  # v7x: 64 MiB / TC
    budget_bytes = (4 if small_vmem else 8) * 1024 * 1024  # f32 working tile
    budget_elems = budget_bytes // 4

    c_lanes = _round_up(num_classes, _LANE)                # VMEM lane footprint

    if c_lanes * _SUBLANE <= budget_elems:
        # whole class row fits: 1-D batch grid, block (tb, C)
        tb = _pick_tb(batch, budget_elems // c_lanes)
        return tb, None, small_vmem

    # vocab-scale C: stream the class axis with an online LSE
    tb = _pick_tb(batch, 64)
    tc = (max(budget_elems // max(tb, 1), _LANE) // _LANE) * _LANE
    tc = max(_LANE, min(tc, c_lanes))
    return tb, tc, small_vmem


def _vmem_limit_bytes(tb, lanes, itemsize, small_vmem):
    in_tile = tb * lanes * itemsize
    work = 3 * tb * lanes * 4                 # f32 cast / exp / mask working set
    need = 2 * in_tile + work + (1 << 20)     # double-buffered inputs + slack
    cap = (32 if small_vmem else 64) * 1024 * 1024
    return int(min(cap, max(16 * 1024 * 1024, need)))


# ---------------------------------------------------------------------------
# Path A: whole class row per tile (1-D batch grid)
# ---------------------------------------------------------------------------
def _focal_kernel(logits_ref, targets_ref, out_ref):
    # logits_ref: (tb, C) in caller dtype; targets_ref: (tb, 1) int32
    x = logits_ref[...].astype(jnp.float32)
    t = targets_ref[...]

    # numerically stable log-sum-exp along the class (lane) axis; the lane
    # tail (C not multiple of 128) is masked by Mosaic since the block dim
    # equals the full array extent.
    m = jnp.max(x, axis=-1, keepdims=True)
    lse = jnp.log(jnp.sum(jnp.exp(x - m), axis=-1, keepdims=True)) + m

    # target logit via a one-hot lane mask (no full logp tile materialized)
    cls = jax.lax.broadcasted_iota(jnp.int32, x.shape, 1)
    picked = jnp.sum(jnp.where(cls == t, x, 0.0), axis=-1, keepdims=True)

    valid = t != IGNORE_INDEX
    ce = jnp.where(valid, lse - picked, 0.0)        # (tb, 1)

    pt = jnp.exp(-ce)
    u = 1.0 - pt
    out_ref[...] = ALPHA * (u * u) * ce             # gamma == 2 -> square


# ---------------------------------------------------------------------------
# Path B: streamed class axis (2-D grid, online max/LSE, flash-softmax style)
# ---------------------------------------------------------------------------
def _focal_streamed_kernel(logits_ref, targets_ref, out_ref,
                           m_sc, s_sc, p_sc, *, num_classes, class_block):
    j = pl.program_id(1)

    @pl.when(j == 0)
    def _():
        m_sc[...] = jnp.full_like(m_sc, -jnp.inf)
        s_sc[...] = jnp.zeros_like(s_sc)
        p_sc[...] = jnp.zeros_like(p_sc)

    x_raw = logits_ref[...].astype(jnp.float32)      # (tb, tc)
    t = targets_ref[...]                             # (tb, 1)

    cls = j * class_block + jax.lax.broadcasted_iota(jnp.int32, x_raw.shape, 1)
    in_range = cls < num_classes                     # mask ragged class tail
    x = jnp.where(in_range, x_raw, -jnp.inf)

    # target-logit accumulator (matches at most one lane over all blocks)
    p_sc[...] += jnp.sum(jnp.where(cls == t, x_raw, 0.0), axis=-1, keepdims=True)

    # online max / sum-exp
    m_prev = m_sc[...]
    m_new = jnp.maximum(m_prev, jnp.max(x, axis=-1, keepdims=True))
    s_sc[...] = (s_sc[...] * jnp.exp(m_prev - m_new)
                 + jnp.sum(jnp.exp(x - m_new), axis=-1, keepdims=True))
    m_sc[...] = m_new

    @pl.when(j == pl.num_programs(1) - 1)
    def _():
        lse = jnp.log(s_sc[...]) + m_sc[...]
        valid = t != IGNORE_INDEX
        ce = jnp.where(valid, lse - p_sc[...], 0.0)
        pt = jnp.exp(-ce)
        u = 1.0 - pt
        out_ref[...] = ALPHA * (u * u) * ce


# ---------------------------------------------------------------------------
# Wrapper
# ---------------------------------------------------------------------------
@functools.partial(jax.jit, static_argnames=("reduction", "class_block"))
def focal_loss(logits, targets, reduction="mean", class_block=None):
    """logits: (B, C) float, targets: (B,) int. Matches the PyTorch FocalLoss.
    `class_block` (multiple of 128) forces the streamed class-axis path; it is
    normally chosen automatically for vocab-scale C."""
    B, C = logits.shape
    itemsize = jnp.dtype(logits.dtype).itemsize

    tb, tc, small_vmem = _plan(B, C)
    if class_block is not None:
        tc = class_block                 # testing / tuning override

    t = targets.astype(jnp.int32).reshape(B, 1)
    nb = pl.cdiv(B, tb)

    if tc is None:
        c_lanes = _round_up(C, _LANE)
        per_sample = pl.pallas_call(
            _focal_kernel,
            out_shape=jax.ShapeDtypeStruct((B, 1), jnp.float32),
            grid=(nb,),
            in_specs=[
                pl.BlockSpec((tb, C), lambda i: (i, 0)),
                pl.BlockSpec((tb, 1), lambda i: (i, 0)),
            ],
            out_specs=pl.BlockSpec((tb, 1), lambda i: (i, 0)),
            compiler_params=pltpu.CompilerParams(
                dimension_semantics=("parallel",),
                vmem_limit_bytes=_vmem_limit_bytes(tb, c_lanes, itemsize,
                                                   small_vmem),
            ),
        )(logits, t)
    else:
        nc = pl.cdiv(C, tc)
        kern = functools.partial(_focal_streamed_kernel,
                                 num_classes=C, class_block=tc)
        per_sample = pl.pallas_call(
            kern,
            out_shape=jax.ShapeDtypeStruct((B, 1), jnp.float32),
            grid=(nb, nc),
            in_specs=[
                pl.BlockSpec((tb, tc), lambda i, j: (i, j)),
                pl.BlockSpec((tb, 1), lambda i, j: (i, 0)),
            ],
            out_specs=pl.BlockSpec((tb, 1), lambda i, j: (i, 0)),
            scratch_shapes=[pltpu.VMEM((tb, 1), jnp.float32)] * 3,
            compiler_params=pltpu.CompilerParams(
                dimension_semantics=("parallel", "arbitrary"),
                vmem_limit_bytes=_vmem_limit_bytes(tb, tc, itemsize,
                                                   small_vmem),
            ),
        )(logits, t)

    if reduction == "mean":
        # torch: cross_entropy(reduction='none') zeroes ignored rows, then
        # .mean() divides by the full batch size B.
        return jnp.sum(per_sample) / B
    elif reduction == "sum":
        return jnp.sum(per_sample)
    else:
        return per_sample[:, 0]


def _reference(logits, targets, reduction="mean"):
    logp = jax.nn.log_softmax(logits.astype(jnp.float32), axis=-1)
    safe_t = jnp.where(targets == IGNORE_INDEX, 0, targets)
    picked = jnp.take_along_axis(logp, safe_t[:, None], axis=-1)[:, 0]
    ce = jnp.where(targets == IGNORE_INDEX, 0.0, -picked)
    pt = jnp.exp(-ce)
    focal = ALPHA * (1.0 - pt) ** GAMMA * ce
    if reduction == "mean":
        return jnp.mean(focal)
    elif reduction == "sum":
        return jnp.sum(focal)
    return focal


if __name__ == "__main__":
    key = jax.random.PRNGKey(0)

    # --- test 1: simple path (whole class row per tile) --------------------
    B, C = 8, 32
    k1, k2, k3, k4 = jax.random.split(key, 4)
    logits = jax.random.normal(k1, (B, C), dtype=jnp.float32)
    targets = jax.random.randint(k2, (B,), 0, C, dtype=jnp.int32)
    targets = targets.at[3].set(IGNORE_INDEX)       # exercise ignore_index

    out = jax.block_until_ready(focal_loss(logits, targets, reduction="mean"))
    ref = _reference(logits, targets, reduction="mean")
    assert jnp.allclose(out, ref, rtol=1e-5, atol=1e-5), (out, ref)

    per = jax.block_until_ready(focal_loss(logits, targets, reduction="none"))
    per_ref = _reference(logits, targets, reduction="none")
    assert jnp.allclose(per, per_ref, rtol=1e-5, atol=1e-5), (per, per_ref)

    # --- test 2: streamed class-axis path (forced small class_block) -------
    B2, C2 = 16, 300                                # ragged class tail too
    logits2 = jax.random.normal(k3, (B2, C2), dtype=jnp.float32)
    targets2 = jax.random.randint(k4, (B2,), 0, C2, dtype=jnp.int32)
    targets2 = targets2.at[5].set(IGNORE_INDEX)

    out2 = jax.block_until_ready(
        focal_loss(logits2, targets2, reduction="mean", class_block=128))
    ref2 = _reference(logits2, targets2, reduction="mean")
    assert jnp.allclose(out2, ref2, rtol=1e-5, atol=1e-5), (out2, ref2)

    per2 = jax.block_until_ready(
        focal_loss(logits2, targets2, reduction="none", class_block=128))
    per2_ref = _reference(logits2, targets2, reduction="none")
    assert jnp.allclose(per2, per2_ref, rtol=1e-5, atol=1e-5), (per2, per2_ref)

    s2 = jax.block_until_ready(
        focal_loss(logits2, targets2, reduction="sum", class_block=128))
    s2_ref = _reference(logits2, targets2, reduction="sum")
    assert jnp.allclose(s2, s2_ref, rtol=1e-5, atol=1e-5), (s2, s2_ref)

    print("KERNEL_OK")
</pallas_src>

<mosaic_0001>
module attributes {stable_mosaic.version = 11 : i64} {
  func.func @_focal_kernel(%arg0: i32, %arg1: memref<8x32xf32, #tpu.memory_space<vmem>>, %arg2: memref<8x1xi32, #tpu.memory_space<vmem>>, %arg3: memref<8x1xf32, #tpu.memory_space<vmem>>) attributes {dimension_semantics = [#tpu.dimension_semantics<parallel>], iteration_bounds = array<i64: 1>, scalar_prefetch = 0 : i64, scratch_operands = 0 : i64, tpu.core_type = #tpu.core_type<tc>, window_params = [{transform_indices = @transform_0, window_bounds = array<i64: 8, 32>}, {transform_indices = @transform_1, window_bounds = array<i64: 8, 1>}, {transform_indices = @transform_2, window_bounds = array<i64: 8, 1>}]} {
    %c0 = arith.constant 0 : index
    %c0_0 = arith.constant 0 : index
    %0 = vector.load %arg1[%c0, %c0_0] : memref<8x32xf32, #tpu.memory_space<vmem>>, vector<8x32xf32>
    %c0_1 = arith.constant 0 : index
    %c0_2 = arith.constant 0 : index
    %1 = vector.load %arg2[%c0_1, %c0_2] : memref<8x1xi32, #tpu.memory_space<vmem>>, vector<8x1xi32>
    %cst = arith.constant dense<0xFF800000> : vector<8xf32>
    %2 = vector.multi_reduction <maximumf>, %0, %cst [1] : vector<8x32xf32> to vector<8xf32>
    %3 = vector.shape_cast %2 : vector<8xf32> to vector<8x1xf32>
    %4 = vector.broadcast %3 : vector<8x1xf32> to vector<8x32xf32>
    %5 = arith.subf %0, %4 : vector<8x32xf32>
    %6 = math.exp %5 : vector<8x32xf32>
    %cst_3 = arith.constant dense<0.000000e+00> : vector<8xf32>
    %7 = vector.multi_reduction <add>, %6, %cst_3 [1] : vector<8x32xf32> to vector<8xf32>
    %8 = vector.shape_cast %7 : vector<8xf32> to vector<8x1xf32>
    %9 = math.log %8 : vector<8x1xf32>
    %10 = arith.addf %9, %3 : vector<8x1xf32>
    %11 = tpu.iota {dimensions = array<i32: 1>} : vector<8x32xi32>
    %12 = vector.broadcast %1 : vector<8x1xi32> to vector<8x32xi32>
    %13 = arith.cmpi eq, %11, %12 : vector<8x32xi32>
    %cst_4 = arith.constant 0.000000e+00 : f32
    %14 = vector.broadcast %cst_4 : f32 to vector<8x32xf32>
    %15 = arith.select %13, %0, %14 : vector<8x32xi1>, vector<8x32xf32>
    %cst_5 = arith.constant dense<0.000000e+00> : vector<8xf32>
    %16 = vector.multi_reduction <add>, %15, %cst_5 [1] : vector<8x32xf32> to vector<8xf32>
    %17 = vector.shape_cast %16 : vector<8xf32> to vector<8x1xf32>
    %c-100_i32 = arith.constant -100 : i32
    %18 = vector.broadcast %c-100_i32 : i32 to vector<8x1xi32>
    %19 = arith.cmpi ne, %1, %18 : vector<8x1xi32>
    %20 = arith.subf %10, %17 : vector<8x1xf32>
    %cst_6 = arith.constant 0.000000e+00 : f32
    %21 = vector.broadcast %cst_6 : f32 to vector<8x1xf32>
    %22 = arith.select %19, %20, %21 : vector<8x1xi1>, vector<8x1xf32>
    %cst_7 = arith.constant 0.000000e+00 : f32
    %23 = vector.broadcast %cst_7 : f32 to vector<8x1xf32>
    %24 = arith.subf %23, %22 : vector<8x1xf32>
    %25 = math.exp %24 : vector<8x1xf32>
    %cst_8 = arith.constant 1.000000e+00 : f32
    %26 = vector.broadcast %cst_8 : f32 to vector<8x1xf32>
    %27 = arith.subf %26, %25 : vector<8x1xf32>
    %28 = arith.mulf %27, %27 : vector<8x1xf32>
    %cst_9 = arith.constant 1.000000e+00 : f32
    %29 = vector.broadcast %cst_9 : f32 to vector<8x1xf32>
    %30 = arith.mulf %29, %28 : vector<8x1xf32>
    %31 = arith.mulf %30, %22 : vector<8x1xf32>
    %c0_10 = arith.constant 0 : index
    %c0_11 = arith.constant 0 : index
    %32 = vector.load %arg3[%c0_10, %c0_11] : memref<8x1xf32, #tpu.memory_space<vmem>>, vector<8x1xf32>
    tpu.vector_store %arg3[%c0_10, %c0_11], %31 {strides = array<i32>} : memref<8x1xf32, #tpu.memory_space<vmem>>, vector<8x1xf32>,
    return
  }
  func.func @transform_0(%arg0: i32) -> (i32, i32) {
    %c0_i32 = arith.constant 0 : i32
    %c0_i32_0 = arith.constant 0 : i32
    return %arg0, %c0_i32 : i32, i32
  }
  func.func @transform_1(%arg0: i32) -> (i32, i32) {
    %c0_i32 = arith.constant 0 : i32
    %c0_i32_0 = arith.constant 0 : i32
    return %arg0, %c0_i32 : i32, i32
  }
  func.func @transform_2(%arg0: i32) -> (i32, i32) {
    %c0_i32 = arith.constant 0 : i32
    %c0_i32_0 = arith.constant 0 : i32
    return %arg0, %c0_i32 : i32, i32
  }
}

</mosaic_0001>

<bundles_post_ra>
// kernel: focal_loss.1
= control target key start
LH: loop header
LB: loop body
LE: loop exit
PB: predicated region body
PF: predicated region fallthrough
CT: control target
= control target key end

     0   :  { %vm13_vm0 = vcmask 261120   ;;  %v59_v1 = vmov 0   ;;  %v26_v7 = vlaneseq  ;;  %vm45_vm3 = vcmask 7168   ;;  %s87_s0 = inlined_call_operand.vmem [shape: f32[8,32], index: 0, kind: input, shape index: {}]   ;;  %s88_s1 = inlined_call_operand.vmem [shape: s32[8,1], index: 1, kind: input, shape index: {}]   ;;  %s89_s2 = inlined_call_operand.vmem [shape: f32[8,1], index: 2, kind: output, shape index: {}]  }
   0x1   :  { %v11_v0 = vld [vmem:[%s87_s0] sm:$0xff]  ;;  %52 = vset.pattern.permute.xlu0 %v59_v1 }
   0x2   :  { %v14_v2 = vsel %vm13_vm0, %v11_v0, -inf  ;;  %v12_v3 = vld [vmem:[%s88_s1] sm:$0xff]  ;;  %v27_v8 = vand.u32 127, %v26_v7 }
   0x3   :  { %15 = vmax.xlane.f32.xlu0 %v14_v2  ;;  %vm36_vm2 = vcmp.ne.s32.totalorder %v12_v3, 4294967196 }
  0x19   :  { %29 = vperm.xlu0 %52, %v12_v3  }
  0x8c   :  { %v16_v4 = vpop.xlane.xlu0 %15 }
  0x8d   :  { %v17_v5 = vsub.f32 %v11_v0, %v16_v4 }
  0x8f   :  { %v18_v6 = vmul.f32 1.442695, %v17_v5 }
  0x91   :  { %53 = vpow2.f32 %v18_v6 }
  0x94   :  { %v30_v9 = vpop.permute.xlu0 %29 }
  0x95   :  { %vm31_vm1 = vcmp.eq.s32.totalorder %v27_v8, %v30_v9 }
  0x96   :  { %v32_v11 = vsel %vm31_vm1, %v11_v0, 0.0 }
  0x97   :  { %v33_v13 = vsel %vm13_vm0, %v32_v11, 0.0 }
  0x9e   :  { %v54_v10 = vpop.eup %53 }
  0x9f   :  { %v20_v12 = vsel %vm13_vm0, %v54_v10, 0.0 }
  0xa0   :  { %21 = vadd.xlane.f32.xlu1 %v20_v12 }
  0xa4   :  { %34 = vadd.xlane.f32.xlu1 %v33_v13 }
 0x129   :  { %v22_v14 = vpop.xlane.xlu1 %21 }
 0x12a   :  { %55 = vlog2.f32 %v22_v14 }
 0x12d   :  { %v35_v17 = vpop.xlane.xlu1 %34 }
 0x137   :  { %v56_v15 = vpop.eup %55 }
 0x138   :  { %v24_v16 = vmul.f32 0.6931472, %v56_v15 }
 0x13a   :  { %v25_v18 = vadd.f32 %v24_v16, %v16_v4 }
 0x13c   :  { %v37_v19 = vsub.f32 %v25_v18, %v35_v17 }
 0x13e   :  { %v38_v20 = vsel %vm36_vm2, %v37_v19, 0.0 }
 0x13f   :  { %v39_v21 = vsub.f32 0.0, %v38_v20 }
 0x141   :  { %v40_v22 = vmul.f32 1.442695, %v39_v21 }
 0x143   :  { %57 = vpow2.f32 %v40_v22 }
 0x150   :  { %v58_v23 = vpop.eup %57 }
 0x151   :  { %v42_v24 = vsub.f32 1.0, %v58_v23 }
 0x153   :  { %v43_v25 = vmul.f32 %v42_v24, %v42_v24 }
 0x155   :  { %v44_v26 = vmul.f32 %v43_v25, %v38_v20 }
 0x157   :  { %46 = vst.msk [vmem:[%s89_s2] sm:$0xff] %vm45_vm3, %v44_v26 }

</bundles_post_ra>
